<compile_context>
chip_gen: v5e
topology: v5e:2x2
jax: 0.10.0
libtpu: 0.0.40
codegen_flags: <defaults>
</compile_context>

<pallas_src>
import jax
import jax.numpy as jnp
from jax.experimental import pallas as pl
from jax.experimental.pallas import tpu as pltpu


# ---------------------------------------------------------------------------
# Kernels
# ---------------------------------------------------------------------------

def _squeeze_kernel(x_ref, sum_ref):
    """Accumulate per-(b, c) partial sums over the H*W (lane) axis.

    x_ref:   (bc_blk, hw_blk) tile of x viewed as (B*C, H*W)
    sum_ref: (bc_blk, 1) resident accumulator (same output block across HW tiles)
    """
    @pl.when(pl.program_id(1) == 0)
    def _():
        sum_ref[...] = jnp.zeros_like(sum_ref)

    # Row-sum of the tile. This kernel is HBM-bandwidth bound, so the cross-lane
    # reduction is fully hidden under the x-tile DMA; for very large HW tiles it
    # could alternatively be pushed to the MXU as x @ ones((hw_blk, 1)).
    sum_ref[...] += jnp.sum(x_ref[...], axis=-1, keepdims=True)


def _fc_kernel(y_ref, w1t_ref, w2t_ref, z_ref):
    """z = relu(relu(y @ w1t) @ w2t); the 1/(H*W) scale is pre-folded into w1t."""
    h = jnp.maximum(
        jnp.dot(y_ref[...], w1t_ref[...], preferred_element_type=jnp.float32), 0.0)
    z = jnp.maximum(
        jnp.dot(h, w2t_ref[...], preferred_element_type=jnp.float32), 0.0)
    z_ref[...] = z


def _expand_kernel(z_ref, o_ref):
    """Broadcast the per-(b, c) excitation across the spatial (lane) axis."""
    # z_ref: (bc_blk, 1)  ->  o_ref: (bc_blk, hw_blk)
    o_ref[...] = jnp.broadcast_to(z_ref[...], o_ref.shape)


# ---------------------------------------------------------------------------
# Wrapper
# ---------------------------------------------------------------------------

def _pick_tile(total, target, align):
    """Largest divisor of `total` that is a multiple of `align` and <= target.

    Falls back to `total` (full-dimension block, always legal) when `total`
    is not a multiple of `align`.
    """
    if total % align != 0:
        return total
    hi = max(align, min(total, target))
    for mult in range(hi // align, 0, -1):
        cand = mult * align
        if total % cand == 0:
            return cand
    return total


def _tile_targets():
    """Per-generation tile budgets: (rows on sublanes, lanes on HW)."""
    try:
        vmem = pltpu.get_tpu_info().vmem_capacity_bytes
    except Exception:
        vmem = 64 << 20
    if vmem >= (100 << 20):       # v5e / v6e: 128 MiB VMEM per TensorCore
        return 512, 2048          # ~4 MiB f32 per pipelined x tile
    return 256, 1024              # v7x: 64 MiB VMEM -> ~1 MiB per x tile


def se_layer_relu(x, w1, w2):
    """SELayerReLU forward.

    x:  (B, C, H, W) float32
    w1: (C//r, C)  fc1 weight (PyTorch Linear layout, no bias)
    w2: (C, C//r)  fc2 weight (PyTorch Linear layout, no bias)
    returns (B, C, H, W) float32
    """
    B, C, H, W = x.shape
    HW = H * W
    BC = B * C

    x2 = x.reshape(BC, HW)
    # Fold the 1/(H*W) average-pool scale into the first FC weight (free).
    w1t = (w1.T * (1.0 / HW)).astype(jnp.float32)    # (C, Cr)
    w2t = w2.T.astype(jnp.float32)                   # (Cr, C)

    bc_target, hw_target = _tile_targets()
    bc_blk = _pick_tile(BC, bc_target, 8)
    hw_blk = _pick_tile(HW, hw_target, 128)
    grid = (BC // bc_blk, HW // hw_blk)

    # --- 1) squeeze: per-(b, c) sums over H*W (tiled, pipelined) -------------
    sums = pl.pallas_call(
        _squeeze_kernel,
        out_shape=jax.ShapeDtypeStruct((BC, 1), jnp.float32),
        grid=grid,
        in_specs=[pl.BlockSpec((bc_blk, hw_blk), lambda i, k: (i, k))],
        out_specs=pl.BlockSpec((bc_blk, 1), lambda i, k: (i, 0)),
        compiler_params=pltpu.CompilerParams(
            dimension_semantics=("parallel", "arbitrary")),
    )(x2)

    # --- 2) excitation: relu(relu(mean @ w1.T) @ w2.T) — tiny matmuls --------
    z = pl.pallas_call(
        _fc_kernel,
        out_shape=jax.ShapeDtypeStruct((B, C), jnp.float32),
    )(sums.reshape(B, C), w1t, w2t)

    # --- 3) expand: broadcast (B*C,) back over H*W with lane-dense writes ----
    # TODO(synk): when this layer feeds an elementwise multiply, fuse the expand
    # with that consumer instead of materializing the broadcast tensor.
    out2 = pl.pallas_call(
        _expand_kernel,
        out_shape=jax.ShapeDtypeStruct((BC, HW), jnp.float32),
        grid=grid,
        in_specs=[pl.BlockSpec((bc_blk, 1), lambda i, k: (i, 0))],
        out_specs=pl.BlockSpec((bc_blk, hw_blk), lambda i, k: (i, k)),
        compiler_params=pltpu.CompilerParams(
            dimension_semantics=("parallel", "parallel")),
    )(z.reshape(BC, 1))

    return out2.reshape(B, C, H, W)


def se_layer_relu_ref(x, w1, w2):
    """Pure-JAX reference mirroring the PyTorch module."""
    B, C, H, W = x.shape
    y = jnp.mean(x, axis=(2, 3))                      # (B, C)
    y = jnp.maximum(y @ w1.T, 0.0)                    # (B, C//r)
    y = jnp.maximum(y @ w2.T, 0.0)                    # (B, C)
    return jnp.broadcast_to(y[:, :, None, None], (B, C, H, W))


if __name__ == "__main__":
    # SELayerReLU(channel=64, reduction=16)  ->  hidden = 4
    B, C, H, W = 2, 64, 16, 16          # H*W = 256: lane-dense (multiple of 128)
    reduction = 16
    Cr = C // reduction

    key = jax.random.PRNGKey(0)
    kx, k1, k2 = jax.random.split(key, 3)
    x = jax.random.normal(kx, (B, C, H, W), dtype=jnp.float32)
    # PyTorch Linear weight shapes: (out_features, in_features).
    w1 = jax.random.normal(k1, (Cr, C), dtype=jnp.float32) * 0.1   # fc1: (C//r, C)
    w2 = jax.random.normal(k2, (C, Cr), dtype=jnp.float32) * 0.1   # fc2: (C, C//r)

    out = se_layer_relu(x, w1, w2)
    out = jax.block_until_ready(out)

    ref = se_layer_relu_ref(x, w1, w2)
    assert out.shape == (B, C, H, W)
    assert jnp.allclose(out, ref, atol=1e-5, rtol=1e-5), "mismatch vs reference"

    print("KERNEL_OK")
</pallas_src>

<mosaic_0001>
module attributes {stable_mosaic.version = 11 : i64} {
  func.func @_squeeze_kernel(%arg0: i32, %arg1: i32, %arg2: memref<128x256xf32, #tpu.memory_space<vmem>>, %arg3: memref<128x1xf32, #tpu.memory_space<vmem>>) attributes {dimension_semantics = [#tpu.dimension_semantics<parallel>, #tpu.dimension_semantics<arbitrary>], iteration_bounds = array<i64: 1, 1>, scalar_prefetch = 0 : i64, scratch_operands = 0 : i64, tpu.core_type = #tpu.core_type<tc>, window_params = [{transform_indices = @transform_0, window_bounds = array<i64: 128, 256>}, {transform_indices = @transform_1, window_bounds = array<i64: 128, 1>}]} {
    %c0_i32 = arith.constant 0 : i32
    %0 = arith.cmpi eq, %arg1, %c0_i32 : i32
    %1 = arith.extui %0 : i1 to i32
    %c0_i32_0 = arith.constant 0 : i32
    %2 = arith.cmpi ne, %1, %c0_i32_0 : i32
    scf.if %2 {
      %cst_6 = arith.constant 0.000000e+00 : f32
      %9 = vector.broadcast %cst_6 : f32 to vector<128x1xf32>
      %c0_7 = arith.constant 0 : index
      %c0_8 = arith.constant 0 : index
      %10 = vector.load %arg3[%c0_7, %c0_8] : memref<128x1xf32, #tpu.memory_space<vmem>>, vector<128x1xf32>
      tpu.vector_store %arg3[%c0_7, %c0_8], %9 {strides = array<i32>} : memref<128x1xf32, #tpu.memory_space<vmem>>, vector<128x1xf32>,
    } else {
    }
    %c0 = arith.constant 0 : index
    %c0_1 = arith.constant 0 : index
    %3 = vector.load %arg3[%c0, %c0_1] : memref<128x1xf32, #tpu.memory_space<vmem>>, vector<128x1xf32>
    %c0_2 = arith.constant 0 : index
    %c0_3 = arith.constant 0 : index
    %4 = vector.load %arg2[%c0_2, %c0_3] : memref<128x256xf32, #tpu.memory_space<vmem>>, vector<128x256xf32>
    %cst = arith.constant dense<0.000000e+00> : vector<128xf32>
    %5 = vector.multi_reduction <add>, %4, %cst [1] : vector<128x256xf32> to vector<128xf32>
    %6 = vector.shape_cast %5 : vector<128xf32> to vector<128x1xf32>
    %7 = arith.addf %3, %6 : vector<128x1xf32>
    %c0_4 = arith.constant 0 : index
    %c0_5 = arith.constant 0 : index
    %8 = vector.load %arg3[%c0_4, %c0_5] : memref<128x1xf32, #tpu.memory_space<vmem>>, vector<128x1xf32>
    tpu.vector_store %arg3[%c0_4, %c0_5], %7 {strides = array<i32>} : memref<128x1xf32, #tpu.memory_space<vmem>>, vector<128x1xf32>,
    return
  }
  func.func @transform_0(%arg0: i32, %arg1: i32) -> (i32, i32) {
    %c0_i32 = arith.constant 0 : i32
    return %arg0, %arg1 : i32, i32
  }
  func.func @transform_1(%arg0: i32, %arg1: i32) -> (i32, i32) {
    %c0_i32 = arith.constant 0 : i32
    %c0_i32_0 = arith.constant 0 : i32
    return %arg0, %c0_i32 : i32, i32
  }
}

</mosaic_0001>

<bundles_post_ra>
// kernel: tpu_custom_call.1
= control target key start
LH: loop header
LB: loop body
LE: loop exit
PB: predicated region body
PF: predicated region fallthrough
CT: control target
= control target key end

     0   :  { %6 = vsyncpa [#allocation3], 0  ;;  %s209_s9 = smov [#allocation2]   ;;  %s210_s11 = smov 256   ;;  %s402_s0 = inlined_call_operand.hbm [shape: f32[128,256], index: 0, kind: input, shape index: {}]   ;;  %s403_s1 = inlined_call_operand.vmem [shape: f32[128,1], index: 1, kind: output, shape index: {}]  }
   0x1   :  { %s11_s8 = sshll.u32 %s402_s0, 4  ;;  %s13_s10 = sshll.u32 %s209_s9, 4  ;;  %s12_s8 = int_to_ptr.hbm [resolvable:$true] %s11_s8  ;;  %s14_s10 = int_to_ptr.vmem [resolvable:$true] %s13_s10 }
   0x2   :  { %s211_s12 = smov 16  }
   0x3   :  { %19 = dma.hbm_to_vmem [thread:$0]  %s12_s8, 4096, %s14_s10, [#allocation3], %s210_s11, %s210_s11, %s211_s12  }
   0x4   :  { %207 = dma.done.wait [#allocation3], 4096  }
   0x5   :  { %208 = vsyncadd [#allocation3], 4294963200  ;;  %v61_v0 = vld [vmem:[#allocation2] sm:$0xff]  ;;  %v62_v1 = vld [vmem:[#allocation2 + $0x8] sm:$0xff]  ;;  %vm28_vm0 = vcmask 7168   ;;  %v212_v21 = vmov 0.0  }
   0x6   :  { %v69_v2 = vld [vmem:[#allocation2 + $0x40] sm:$0xff]  ;;  %v93_v3 = vadd.f32 %v62_v1, %v61_v0  ;;  %v70_v4 = vld [vmem:[#allocation2 + $0x48] sm:$0xff]  ;;  %v63_v9 = vld [vmem:[#allocation2 + $0x10] sm:$0xff]  ;;  %29 = vst.msk [vmem:[%s403_s1] sm:$0xff] %vm28_vm0, %v212_v21 }
   0x7   :  { %v65_v5 = vld [vmem:[#allocation2 + $0x20] sm:$0xff]  ;;  %v66_v6 = vld [vmem:[#allocation2 + $0x28] sm:$0xff]  ;;  %v105_v7 = vadd.f32 %v70_v4, %v69_v2  ;;  %v64_v10 = vld [vmem:[#allocation2 + $0x18] sm:$0xff]  ;;  %30 = vst.msk [vmem:[%s403_s1 + $0x8] sm:$0xff] %vm28_vm0, %v212_v21 }
   0x8   :  { %v99_v8 = vadd.f32 %v66_v6, %v65_v5  ;;  %94 = vadd.xlane.f32.xlu0 %v93_v3  ;;  %v71_v11 = vld [vmem:[#allocation2 + $0x50] sm:$0xff]  ;;  %v72_v12 = vld [vmem:[#allocation2 + $0x58] sm:$0xff]  ;;  %v96_v15 = vadd.f32 %v64_v10, %v63_v9  ;;  %v73_v18 = vld [vmem:[#allocation2 + $0x60] sm:$0xff]  ;;  %31 = vst.msk [vmem:[%s403_s1 + $0x10] sm:$0xff] %vm28_vm0, %v212_v21 }
   0x9   :  { %106 = vadd.xlane.f32.xlu2 %v105_v7  ;;  %v67_v13 = vld [vmem:[#allocation2 + $0x30] sm:$0xff]  ;;  %v68_v14 = vld [vmem:[#allocation2 + $0x38] sm:$0xff]  ;;  %v108_v16 = vadd.f32 %v72_v12, %v71_v11  ;;  %v74_v19 = vld [vmem:[#allocation2 + $0x68] sm:$0xff]  ;;  %32 = vst.msk [vmem:[%s403_s1 + $0x18] sm:$0xff] %vm28_vm0, %v212_v21 }
   0xa   :  { %100 = vadd.xlane.f32.xlu1 %v99_v8  ;;  %v102_v17 = vadd.f32 %v68_v14, %v67_v13  ;;  %v77_v20 = vld [vmem:[#allocation2 + $0x80] sm:$0xff]  ;;  %v78_v22 = vld [vmem:[#allocation2 + $0x88] sm:$0xff]  ;;  %v75_v23 = vld [vmem:[#allocation2 + $0x70] sm:$0xff]  ;;  %v111_v25 = vadd.f32 %v74_v19, %v73_v18  ;;  %33 = vst.msk [vmem:[%s403_s1 + $0x20] sm:$0xff] %vm28_vm0, %v212_v21 }
   0xb   :  { %v76_v24 = vld [vmem:[#allocation2 + $0x78] sm:$0xff]  ;;  %v117_v26 = vadd.f32 %v78_v22, %v77_v20  ;;  %34 = vst.msk [vmem:[%s403_s1 + $0x28] sm:$0xff] %vm28_vm0, %v212_v21  ;;  %v79_v28 = vld [vmem:[#allocation2 + $0x90] sm:$0xff]  ;;  %v81_v32 = vld [vmem:[#allocation2 + $0xa0] sm:$0xff] }
   0xc   :  { %v114_v27 = vadd.f32 %v76_v24, %v75_v23  ;;  %35 = vst.msk [vmem:[%s403_s1 + $0x30] sm:$0xff] %vm28_vm0, %v212_v21  ;;  %v80_v29 = vld [vmem:[#allocation2 + $0x98] sm:$0xff]  ;;  %v83_v30 = vld [vmem:[#allocation2 + $0xb0] sm:$0xff]  ;;  %v82_v33 = vld [vmem:[#allocation2 + $0xa8] sm:$0xff] }
   0xd   :  { %36 = vst.msk [vmem:[%s403_s1 + $0x38] sm:$0xff] %vm28_vm0, %v212_v21  ;;  %v84_v31 = vld [vmem:[#allocation2 + $0xb8] sm:$0xff]  ;;  %v120_v34 = vadd.f32 %v80_v29, %v79_v28  ;;  %v123_v36 = vadd.f32 %v82_v33, %v81_v32  ;;  %v85_v37 = vld [vmem:[#allocation2 + $0xc0] sm:$0xff]  ;;  %v86_v38 = vld [vmem:[#allocation2 + $0xc8] sm:$0xff] }
   0xe   :  { %37 = vst.msk [vmem:[%s403_s1 + $0x40] sm:$0xff] %vm28_vm0, %v212_v21  ;;  %v126_v35 = vadd.f32 %v84_v31, %v83_v30  ;;  %v89_v39 = vld [vmem:[#allocation2 + $0xe0] sm:$0xff]  ;;  %v90_v40 = vld [vmem:[#allocation2 + $0xe8] sm:$0xff]  ;;  %v87_v41 = vld [vmem:[#allocation2 + $0xd0] sm:$0xff]  ;;  %v129_v43 = vadd.f32 %v86_v38, %v85_v37 }
   0xf   :  { %38 = vst.msk [vmem:[%s403_s1 + $0x48] sm:$0xff] %vm28_vm0, %v212_v21  ;;  %v88_v42 = vld [vmem:[#allocation2 + $0xd8] sm:$0xff]  ;;  %v135_v44 = vadd.f32 %v90_v40, %v89_v39  ;;  %v91_v46 = vld [vmem:[#allocation2 + $0xf0] sm:$0xff]  ;;  %v45_v49 = vld [vmem:[%s403_s1] sm:$0xff] }
  0x10   :  { %97 = vadd.xlane.f32.xlu0 %v96_v15  ;;  %39 = vst.msk [vmem:[%s403_s1 + $0x50] sm:$0xff] %vm28_vm0, %v212_v21  ;;  %v132_v45 = vadd.f32 %v88_v42, %v87_v41  ;;  %v92_v47 = vld [vmem:[#allocation2 + $0xf8] sm:$0xff]  ;;  %v47_v51 = vld [vmem:[%s403_s1 + $0x10] sm:$0xff]  ;;  %v46_v58 = vld [vmem:[%s403_s1 + $0x8] sm:$0xff] }
  0x11   :  { %109 = vadd.xlane.f32.xlu2 %v108_v16  ;;  %40 = vst.msk [vmem:[%s403_s1 + $0x58] sm:$0xff] %vm28_vm0, %v212_v21  ;;  %v138_v48 = vadd.f32 %v92_v47, %v91_v46  ;;  %v49_v50 = vld [vmem:[%s403_s1 + $0x20] sm:$0xff]  ;;  %v48_v60 = vld [vmem:[%s403_s1 + $0x18] sm:$0xff] }
  0x12   :  { %103 = vadd.xlane.f32.xlu1 %v102_v17  ;;  %41 = vst.msk [vmem:[%s403_s1 + $0x60] sm:$0xff] %vm28_vm0, %v212_v21  ;;  %v50_v59 = vld [vmem:[%s403_s1 + $0x28] sm:$0xff] }
  0x13   :  { %42 = vst.msk [vmem:[%s403_s1 + $0x68] sm:$0xff] %vm28_vm0, %v212_v21  ;;  %v51_v3 = vld [vmem:[%s403_s1 + $0x30] sm:$0xff] }
  0x14   :  { %43 = vst.msk [vmem:[%s403_s1 + $0x70] sm:$0xff] %vm28_vm0, %v212_v21  ;;  %v52_v5 = vld [vmem:[%s403_s1 + $0x38] sm:$0xff] }
  0x15   :  { %44 = vst.msk [vmem:[%s403_s1 + $0x78] sm:$0xff] %vm28_vm0, %v212_v21  ;;  %v53_v4 = vld [vmem:[%s403_s1 + $0x40] sm:$0xff] }
  0x16   :  { %v54_v12 = vld [vmem:[%s403_s1 + $0x48] sm:$0xff] }
  0x17   :  { %v55_v14 = vld [vmem:[%s403_s1 + $0x50] sm:$0xff] }
  0x18   :  { %112 = vadd.xlane.f32.xlu0 %v111_v25  ;;  %v56_v13 = vld [vmem:[%s403_s1 + $0x58] sm:$0xff] }
  0x19   :  { %118 = vadd.xlane.f32.xlu2 %v117_v26  ;;  %v57_v21 = vld [vmem:[%s403_s1 + $0x60] sm:$0xff] }
  0x1a   :  { %115 = vadd.xlane.f32.xlu1 %v114_v27  ;;  %v58_v23 = vld [vmem:[%s403_s1 + $0x68] sm:$0xff] }
  0x1b   :  { %v59_v22 = vld [vmem:[%s403_s1 + $0x70] sm:$0xff] }
  0x1c   :  { %v60_v30 = vld [vmem:[%s403_s1 + $0x78] sm:$0xff] }
  0x20   :  { %121 = vadd.xlane.f32.xlu0 %v120_v34 }
  0x21   :  { %127 = vadd.xlane.f32.xlu2 %v126_v35 }
  0x22   :  { %124 = vadd.xlane.f32.xlu1 %v123_v36 }
  0x28   :  { %130 = vadd.xlane.f32.xlu0 %v129_v43 }
  0x29   :  { %136 = vadd.xlane.f32.xlu2 %v135_v44 }
  0x2a   :  { %133 = vadd.xlane.f32.xlu1 %v132_v45 }
  0x30   :  { %139 = vadd.xlane.f32.xlu0 %v138_v48 }
  0x7b   :  { %v95_v52 = vpop.xlane.xlu0 %94 }
  0x7c   :  { %v141_v53 = vadd.f32 %v95_v52, %v45_v49  ;;  %v107_v54 = vpop.xlane.xlu2 %106 }
  0x7d   :  { %v101_v55 = vpop.xlane.xlu1 %100  ;;  %v145_v56 = vadd.f32 %v107_v54, %v49_v50 }
  0x7e   :  { %v143_v57 = vadd.f32 %v101_v55, %v47_v51  ;;  %158 = vst.msk [vmem:[%s403_s1] sm:$0xff] %vm28_vm0, %v141_v53 }
  0x7f   :  { %162 = vst.msk [vmem:[%s403_s1 + $0x20] sm:$0xff] %vm28_vm0, %v145_v56 }
  0x80   :  { %160 = vst.msk [vmem:[%s403_s1 + $0x10] sm:$0xff] %vm28_vm0, %v143_v57 }
  0x83   :  { %v98_v61 = vpop.xlane.xlu0 %97 }
  0x84   :  { %v142_v62 = vadd.f32 %v98_v61, %v46_v58  ;;  %v110_v63 = vpop.xlane.xlu2 %109 }
  0x85   :  { %v104_v0 = vpop.xlane.xlu1 %103  ;;  %v146_v1 = vadd.f32 %v110_v63, %v50_v59 }
  0x86   :  { %v144_v2 = vadd.f32 %v104_v0, %v48_v60  ;;  %159 = vst.msk [vmem:[%s403_s1 + $0x8] sm:$0xff] %vm28_vm0, %v142_v62 }
  0x87   :  { %163 = vst.msk [vmem:[%s403_s1 + $0x28] sm:$0xff] %vm28_vm0, %v146_v1 }
  0x88   :  { %161 = vst.msk [vmem:[%s403_s1 + $0x18] sm:$0xff] %vm28_vm0, %v144_v2 }
  0x8b   :  { %v113_v6 = vpop.xlane.xlu0 %112 }
  0x8c   :  { %v147_v7 = vadd.f32 %v113_v6, %v51_v3  ;;  %v119_v8 = vpop.xlane.xlu2 %118 }
  0x8d   :  { %v116_v9 = vpop.xlane.xlu1 %115  ;;  %v149_v10 = vadd.f32 %v119_v8, %v53_v4 }
  0x8e   :  { %v148_v11 = vadd.f32 %v116_v9, %v52_v5  ;;  %164 = vst.msk [vmem:[%s403_s1 + $0x30] sm:$0xff] %vm28_vm0, %v147_v7 }
  0x8f   :  { %166 = vst.msk [vmem:[%s403_s1 + $0x40] sm:$0xff] %vm28_vm0, %v149_v10 }
  0x90   :  { %165 = vst.msk [vmem:[%s403_s1 + $0x38] sm:$0xff] %vm28_vm0, %v148_v11 }
  0x93   :  { %v122_v15 = vpop.xlane.xlu0 %121 }
  0x94   :  { %v150_v16 = vadd.f32 %v122_v15, %v54_v12  ;;  %v128_v17 = vpop.xlane.xlu2 %127 }
  0x95   :  { %v125_v18 = vpop.xlane.xlu1 %124  ;;  %v152_v19 = vadd.f32 %v128_v17, %v56_v13 }
  0x96   :  { %v151_v20 = vadd.f32 %v125_v18, %v55_v14  ;;  %167 = vst.msk [vmem:[%s403_s1 + $0x48] sm:$0xff] %vm28_vm0, %v150_v16 }
  0x97   :  { %169 = vst.msk [vmem:[%s403_s1 + $0x58] sm:$0xff] %vm28_vm0, %v152_v19 }
  0x98   :  { %168 = vst.msk [vmem:[%s403_s1 + $0x50] sm:$0xff] %vm28_vm0, %v151_v20 }
  0x9b   :  { %v131_v24 = vpop.xlane.xlu0 %130 }
  0x9c   :  { %v153_v25 = vadd.f32 %v131_v24, %v57_v21  ;;  %v137_v26 = vpop.xlane.xlu2 %136 }
  0x9d   :  { %v134_v27 = vpop.xlane.xlu1 %133  ;;  %v155_v28 = vadd.f32 %v137_v26, %v59_v22 }
  0x9e   :  { %v154_v29 = vadd.f32 %v134_v27, %v58_v23  ;;  %170 = vst.msk [vmem:[%s403_s1 + $0x60] sm:$0xff] %vm28_vm0, %v153_v25 }
  0x9f   :  { %172 = vst.msk [vmem:[%s403_s1 + $0x70] sm:$0xff] %vm28_vm0, %v155_v28 }
  0xa0   :  { %171 = vst.msk [vmem:[%s403_s1 + $0x68] sm:$0xff] %vm28_vm0, %v154_v29 }
  0xa3   :  { %v140_v31 = vpop.xlane.xlu0 %139 }
  0xa4   :  { %v156_v32 = vadd.f32 %v140_v31, %v60_v30 }
  0xa6   :  { %173 = vst.msk [vmem:[%s403_s1 + $0x78] sm:$0xff] %vm28_vm0, %v156_v32 }
  0xa7   :  { %178 = vsyncpa [#allocation3], 1 }

</bundles_post_ra>
